<compile_context>
chip_gen: v5e
topology: v5e:2x2
jax: 0.10.0
libtpu: 0.0.40
codegen_flags: <defaults>
</compile_context>

<pallas_src>
import jax
import jax.numpy as jnp
from jax.experimental import pallas as pl
from jax.experimental.pallas import tpu as pltpu

SEQ_LENGTH = 2   # matches `seq_length = 2` in the reference script
INPUT_SIZE = 1   # passengers time-series: 1 feature per step
HIDDEN_SIZE = 32
BATCH = 2


def make_rnn_kernel(seq_len: int, input_size: int, hidden_size: int):
    """Build a kernel closed over the static (T, I, H)."""
    T, I, H = seq_len, input_size, hidden_size

    # Packed weight slab row layout (every row is H lanes wide).  W_hh^T is
    # placed first so the only MXU operand starts at a sublane-aligned offset.
    R_WHH = 0                  # rows [0, H)          : W_hh^T            (H, H)
    R_WIH = H                  # rows [H, H+I)        : W_ih^T            (I, H)
    R_B = H + I                # row  H+I             : b_ih + b_hh       (1, H)
    R_WLIN = H + I + 1         # rows [R, R+T)        : W_lin.reshape(T,H)(T, H)
    R_BLIN = H + I + 1 + T     # row  R_BLIN          : b_lin broadcast   (1, H)

    def kernel(x_ref, h0_ref, wpack_ref, out_ref, ht_ref):
        # x_ref:     (B, T*I)          flattened input sequence
        # h0_ref:    (B, H)            initial hidden state
        # wpack_ref: (H+I+T+2, H)      packed weights (see layout above)
        # out_ref:   (B, 1)            final linear output
        # ht_ref:    (B, H)            final hidden state
        whh = wpack_ref[R_WHH:R_WHH + H, :]            # (H, H) = W_hh^T
        b = wpack_ref[R_B:R_B + 1, :]                  # (1, H) = b_ih + b_hh

        x = x_ref[...]                                 # (B, T*I)
        h = h0_ref[...]                                # (B, H)
        batch = h.shape[0]

        # ---- Input projection hoisted out of the serial recurrence. ----
        if I == 1:
            # Degenerate K=1 matmul -> VPU broadcast multiply.
            wih_row = wpack_ref[R_WIH:R_WIH + 1, :]    # (1, H)
            x_proj = [x[:, t:t + 1] * wih_row + b for t in range(T)]
        else:
            wih = wpack_ref[R_WIH:R_WIH + I, :]        # (I, H) = W_ih^T
            x_proj = [
                jnp.dot(x[:, t * I:(t + 1) * I], wih,
                        preferred_element_type=jnp.float32) + b
                for t in range(T)
            ]

        # ---- Serial recurrence with fused Linear-head accumulation. ----
        acc = jnp.zeros((batch, H), jnp.float32)
        for t in range(T):                             # static -> unrolled
            h = jnp.tanh(
                x_proj[t]
                + jnp.dot(h, whh, preferred_element_type=jnp.float32))
            # Head: output[b] = sum_{t,h} h_t[b,h] * W_lin[0, t*H + h] + b_lin
            wlin_t = wpack_ref[R_WLIN + t:R_WLIN + t + 1, :]   # (1, H)
            acc = acc + h * wlin_t

        ht_ref[...] = h

        blin_row = wpack_ref[R_BLIN:R_BLIN + 1, :]     # (1, H), all lanes = b_lin
        # (B, 1) store is a masked 1-lane vst; accepted at this batch size.
        out_ref[...] = jnp.sum(acc, axis=-1, keepdims=True) + blin_row[:, 0:1]

    return kernel


def pack_params(params, seq_len):
    """One-time packing of all weights into a single (H+I+T+2, H) f32 slab.

    Do this once at parameter-setup time, NOT per forward call.
    """
    H = params["w_hh"].shape[0]
    I = params["w_ih"].shape[1]
    T = seq_len
    whh_t = params["w_hh"].T.astype(jnp.float32)                    # (H, H)
    wih_t = params["w_ih"].T.astype(jnp.float32)                    # (I, H)
    b_comb = (params["b_ih"] + params["b_hh"]).reshape(1, H).astype(jnp.float32)
    wlin_r = params["w_lin"].reshape(T, H).astype(jnp.float32)      # (T, H)
    blin_row = jnp.full((1, H), params["b_lin"].reshape(()), jnp.float32)
    return jnp.concatenate([whh_t, wih_t, b_comb, wlin_r, blin_row], axis=0)


@jax.jit
def rnn_forward(x, state, w_pack):
    """Pallas implementation of RNN.forward(x, state) -> (output, state)."""
    B, T, I = x.shape
    H = state.shape[-1]
    h0 = state[0]                      # (B, H)
    x2d = x.reshape(B, T * I)          # lane-dense 2-D view of the sequence

    kernel = make_rnn_kernel(T, I, H)
    vmem = pl.BlockSpec(memory_space=pltpu.MemorySpace.VMEM)

    out, h_t = pl.pallas_call(
        kernel,
        out_shape=(jax.ShapeDtypeStruct((B, 1), jnp.float32),
                   jax.ShapeDtypeStruct((B, H), jnp.float32)),
        in_specs=[vmem, vmem, vmem],
        out_specs=(vmem, vmem),
    )(x2d, h0, w_pack)

    return out, h_t.reshape(1, B, H)


def rnn_forward_ref(x, state, params):
    """Pure-JAX reference for correctness checking (mirrors PyTorch)."""
    B, T, I = x.shape
    h = state[0]
    outs = []
    for t in range(T):
        h = jnp.tanh(x[:, t, :] @ params["w_ih"].T + params["b_ih"]
                     + h @ params["w_hh"].T + params["b_hh"])
        outs.append(h)
    out = jnp.stack(outs, axis=1).reshape(B, -1)
    output = out @ params["w_lin"].T + params["b_lin"]
    return output, h[None]


def init_params(key, input_size, hidden_size, seq_len):
    ks = jax.random.split(key, 6)
    s = 1.0 / jnp.sqrt(hidden_size)
    return {
        "w_ih": jax.random.uniform(ks[0], (hidden_size, input_size),
                                   jnp.float32, -s, s),
        "w_hh": jax.random.uniform(ks[1], (hidden_size, hidden_size),
                                   jnp.float32, -s, s),
        "b_ih": jax.random.uniform(ks[2], (hidden_size,), jnp.float32, -s, s),
        "b_hh": jax.random.uniform(ks[3], (hidden_size,), jnp.float32, -s, s),
        "w_lin": jax.random.uniform(ks[4], (1, hidden_size * seq_len),
                                    jnp.float32, -s, s),
        "b_lin": jax.random.uniform(ks[5], (1,), jnp.float32, -s, s),
    }


if __name__ == "__main__":
    key = jax.random.PRNGKey(0)
    k_x, k_p = jax.random.split(key)

    x = jax.random.normal(k_x, (BATCH, SEQ_LENGTH, INPUT_SIZE), jnp.float32)
    # begin_state(): zeros of shape (num_dirs * num_layers, batch, hidden)
    state = jnp.zeros((1, BATCH, HIDDEN_SIZE), jnp.float32)
    params = init_params(k_p, INPUT_SIZE, HIDDEN_SIZE, SEQ_LENGTH)

    # Weight packing happens once, outside the per-step forward path.
    w_pack = pack_params(params, SEQ_LENGTH)

    output, new_state = rnn_forward(x, state, w_pack)
    output = jax.block_until_ready(output)
    new_state = jax.block_until_ready(new_state)

    ref_out, ref_state = rnn_forward_ref(x, state, params)
    assert output.shape == (BATCH, 1)
    assert new_state.shape == (1, BATCH, HIDDEN_SIZE)
    assert jnp.allclose(output, ref_out, atol=1e-5, rtol=1e-5)
    assert jnp.allclose(new_state, ref_state, atol=1e-5, rtol=1e-5)

    print("KERNEL_OK")
</pallas_src>

<mosaic_0001>
module attributes {stable_mosaic.version = 11 : i64} {
  func.func @kernel(%arg0: memref<2x2xf32, #tpu.memory_space<vmem>>, %arg1: memref<2x32xf32, #tpu.memory_space<vmem>>, %arg2: memref<37x32xf32, #tpu.memory_space<vmem>>, %arg3: memref<2x1xf32, #tpu.memory_space<vmem>>, %arg4: memref<2x32xf32, #tpu.memory_space<vmem>>) attributes {dimension_semantics = [], scalar_prefetch = 0 : i64, scratch_operands = 0 : i64, tpu.core_type = #tpu.core_type<tc>} {
    %c0 = arith.constant 0 : index
    %c0_0 = arith.constant 0 : index
    %0 = vector.load %arg2[%c0, %c0_0] : memref<37x32xf32, #tpu.memory_space<vmem>>, vector<32x32xf32>
    %c33 = arith.constant 33 : index
    %c0_1 = arith.constant 0 : index
    %1 = vector.load %arg2[%c33, %c0_1] : memref<37x32xf32, #tpu.memory_space<vmem>>, vector<1x32xf32>
    %c0_2 = arith.constant 0 : index
    %c0_3 = arith.constant 0 : index
    %2 = vector.load %arg0[%c0_2, %c0_3] : memref<2x2xf32, #tpu.memory_space<vmem>>, vector<2x2xf32>
    %c0_4 = arith.constant 0 : index
    %c0_5 = arith.constant 0 : index
    %3 = vector.load %arg1[%c0_4, %c0_5] : memref<2x32xf32, #tpu.memory_space<vmem>>, vector<2x32xf32>
    %c32 = arith.constant 32 : index
    %c0_6 = arith.constant 0 : index
    %4 = vector.load %arg2[%c32, %c0_6] : memref<37x32xf32, #tpu.memory_space<vmem>>, vector<1x32xf32>
    %5 = vector.extract_strided_slice %2 {offsets = [0, 0], sizes = [2, 1], strides = [1, 1]} : vector<2x2xf32> to vector<2x1xf32>
    %6 = vector.broadcast %5 : vector<2x1xf32> to vector<2x32xf32>
    %7 = vector.broadcast %4 : vector<1x32xf32> to vector<2x32xf32>
    %8 = arith.mulf %6, %7 : vector<2x32xf32>
    %9 = vector.broadcast %1 : vector<1x32xf32> to vector<2x32xf32>
    %10 = arith.addf %8, %9 : vector<2x32xf32>
    %11 = vector.extract_strided_slice %2 {offsets = [0, 1], sizes = [2, 1], strides = [1, 1]} : vector<2x2xf32> to vector<2x1xf32>
    %12 = vector.broadcast %11 : vector<2x1xf32> to vector<2x32xf32>
    %13 = vector.broadcast %4 : vector<1x32xf32> to vector<2x32xf32>
    %14 = arith.mulf %12, %13 : vector<2x32xf32>
    %15 = vector.broadcast %1 : vector<1x32xf32> to vector<2x32xf32>
    %16 = arith.addf %14, %15 : vector<2x32xf32>
    %cst = arith.constant 0.000000e+00 : f32
    %17 = vector.broadcast %cst : f32 to vector<2x32xf32>
    %cst_7 = arith.constant dense<0.000000e+00> : vector<2x32xf32>
    %18 = tpu.matmul %3, %0, %cst_7 {dimension_numbers = #tpu.dot_dimension_numbers<[1], [0], [0], [1], [0, 0, 1, 1], [], []>} : vector<2x32xf32>, vector<32x32xf32>, vector<2x32xf32> -> vector<2x32xf32>
    %19 = arith.addf %10, %18 : vector<2x32xf32>
    %20 = math.tanh %19 : vector<2x32xf32>
    %c34 = arith.constant 34 : index
    %c0_8 = arith.constant 0 : index
    %21 = vector.load %arg2[%c34, %c0_8] : memref<37x32xf32, #tpu.memory_space<vmem>>, vector<1x32xf32>
    %22 = vector.broadcast %21 : vector<1x32xf32> to vector<2x32xf32>
    %23 = arith.mulf %20, %22 : vector<2x32xf32>
    %24 = arith.addf %17, %23 : vector<2x32xf32>
    %cst_9 = arith.constant dense<0.000000e+00> : vector<2x32xf32>
    %25 = tpu.matmul %20, %0, %cst_9 {dimension_numbers = #tpu.dot_dimension_numbers<[1], [0], [0], [1], [0, 0, 1, 1], [], []>} : vector<2x32xf32>, vector<32x32xf32>, vector<2x32xf32> -> vector<2x32xf32>
    %26 = arith.addf %16, %25 : vector<2x32xf32>
    %27 = math.tanh %26 : vector<2x32xf32>
    %c35 = arith.constant 35 : index
    %c0_10 = arith.constant 0 : index
    %28 = vector.load %arg2[%c35, %c0_10] : memref<37x32xf32, #tpu.memory_space<vmem>>, vector<1x32xf32>
    %29 = vector.broadcast %28 : vector<1x32xf32> to vector<2x32xf32>
    %30 = arith.mulf %27, %29 : vector<2x32xf32>
    %31 = arith.addf %24, %30 : vector<2x32xf32>
    %c0_11 = arith.constant 0 : index
    %c0_12 = arith.constant 0 : index
    %32 = vector.load %arg4[%c0_11, %c0_12] : memref<2x32xf32, #tpu.memory_space<vmem>>, vector<2x32xf32>
    tpu.vector_store %arg4[%c0_11, %c0_12], %27 {strides = array<i32>} : memref<2x32xf32, #tpu.memory_space<vmem>>, vector<2x32xf32>,
    %c36 = arith.constant 36 : index
    %c0_13 = arith.constant 0 : index
    %33 = vector.load %arg2[%c36, %c0_13] : memref<37x32xf32, #tpu.memory_space<vmem>>, vector<1x32xf32>
    %cst_14 = arith.constant dense<0.000000e+00> : vector<2xf32>
    %34 = vector.multi_reduction <add>, %31, %cst_14 [1] : vector<2x32xf32> to vector<2xf32>
    %35 = vector.shape_cast %34 : vector<2xf32> to vector<2x1xf32>
    %36 = vector.extract_strided_slice %33 {offsets = [0, 0], sizes = [1, 1], strides = [1, 1]} : vector<1x32xf32> to vector<1x1xf32>
    %37 = vector.broadcast %36 : vector<1x1xf32> to vector<2x1xf32>
    %38 = arith.addf %35, %37 : vector<2x1xf32>
    %c0_15 = arith.constant 0 : index
    %c0_16 = arith.constant 0 : index
    %39 = vector.load %arg3[%c0_15, %c0_16] : memref<2x1xf32, #tpu.memory_space<vmem>>, vector<2x1xf32>
    tpu.vector_store %arg3[%c0_15, %c0_16], %38 {strides = array<i32>} : memref<2x1xf32, #tpu.memory_space<vmem>>, vector<2x1xf32>,
    return
  }
}

</mosaic_0001>

<bundles_post_ra>
// kernel: rnn_forward.1
= control target key start
LH: loop header
LB: loop body
LE: loop exit
PB: predicated region body
PF: predicated region fallthrough
CT: control target
= control target key end

     0   :  { %v171_v2 = vmov 0   ;;  %s240_s0 = inlined_call_operand.vmem [shape: f32[2,2], index: 0, kind: input, shape index: {}]   ;;  %s241_s1 = inlined_call_operand.vmem [shape: f32[2,32], index: 1, kind: input, shape index: {}]   ;;  %s242_s2 = inlined_call_operand.vmem [shape: f32[37,32], index: 2, kind: input, shape index: {}]   ;;  %s243_s3 = inlined_call_operand.vmem [shape: f32[2,1], index: 3, kind: output, shape index: {0}]   ;;  %s244_s4 = inlined_call_operand.hbm [shape: f32[2,32], index: 4, kind: output, shape index: {1}]  }
   0x1   :  { %v20_v0 = vld [vmem:[%s242_s2 + $0x18] sm:$0xff]  ;;  %v19_v1 = vld [vmem:[%s242_s2 + $0x10] sm:$0xff]  ;;  %134 = vset.pattern.permute.xlu0 %v171_v2  ;;  %v22_v3 = vld [vmem:[%s240_s0] sm:$0x3] }
   0x2   :  { %56 = vmatpush.msra.mxu0 %v20_v0  ;;  %v18_v4 = vld [vmem:[%s242_s2 + $0x8] sm:$0xff]  ;;  %27 = vperm.xlu0 %134, %v22_v3   ;;  %v17_v5 = vld [vmem:[%s242_s2] sm:$0xff] }
   0x3   :  { %85 = vmatpush.msra.mxu1 %v20_v0 }
   0x4   :  { %57 = vmatpush.msra.mxu0 %v19_v1 }
   0x5   :  { %86 = vmatpush.msra.mxu1 %v19_v1 }
   0x6   :  { %10 = vsyncpa [#allocation3], 0  ;;  %58 = vmatpush.msra.mxu0 %v18_v4  ;;  %v23_v6 = vld [vmem:[%s241_s1] sm:$0x3]  ;;  %vm40_vm0 = vcmask 261120   ;;  %v172_v7 = vmov 1  }
   0x7   :  { %87 = vmatpush.msra.mxu1 %v18_v4  ;;  %v136_v8 = vld [vmem:[%s242_s2 + $0x20] ss:$0 sm:$0xff]  ;;  %v137_v11 = vld [vmem:[%s242_s2 + $0x21] ss:$0 sm:$0xff]  ;;  %s173_s1 = smov [#allocation2]   ;;  %s118_s7 = sshll.u32 %s244_s4, 4  ;;  %s119_s7 = int_to_ptr.hbm [resolvable:$true] %s118_s7 }
   0x8   :  { %59 = vmatpush.msra.mxu0 %v17_v5  ;;  %s116_s30 = sshll.u32 %s173_s1, 4  ;;  %v138_v21 = vld [vmem:[%s242_s2 + $0x22] ss:$0 sm:$0xff]  ;;  %v139_v22 = vld [vmem:[%s242_s2 + $0x23] ss:$0 sm:$0xff]  ;;  %vm99_vm1 = vcmask 254976   ;;  %s117_s30 = int_to_ptr.vmem [resolvable:$true] %s116_s30 }
   0x9   :  { %129 = vmatmul.msk.f32.vlgmr.msra.gmra.mxu0 %vm40_vm0, %v23_v6  ;;  %88 = vmatpush.msra.mxu1 %v17_v5  ;;  %v140_v28 = vld [vmem:[%s242_s2 + $0x24] ss:$0 sm:$0xff]  ;;  %vm107_vm2 = vcmask 1024  }
   0xa   :  { %135 = vset.pattern.permute.xlu0 %v172_v7 }
   0xb   :  { %35 = vperm.xlu0 %135, %v22_v3  }
  0x74   :  { %v28_v9 = vpop.permute.xlu0 %27 }
  0x75   :  { %v31_v10 = vmul.f32 %v136_v8, %v28_v9 }
  0x77   :  { %v33_v12 = vadd.f32 %v137_v11, %v31_v10 }
  0x7d   :  { %v36_v16 = vpop.permute.xlu0 %35 }
  0x7e   :  { %v38_v17 = vmul.f32 %v136_v8, %v36_v16 }
  0x80   :  { %v39_v18 = vadd.f32 %v137_v11, %v38_v17 }
  0x86   :  { %v61_v13 = vpop.f32.mrf.mxu0 }
  0x87   :  { %v64_v14 = vadd.f32 %v61_v13, %v33_v12 }
  0x89   :  { %141 = vtanh.f32 %v64_v14 }
  0x8f   :  { %v142_v15 = vpop.eup %141 }
  0x90   :  { %130 = vmatmul.msk.f32.vlgmr.msra.gmra.mxu1 %vm40_vm0, %v142_v15  ;;  %v68_v24 = vmul.f32 %v142_v15, %v138_v21 }
 0x10d   :  { %v90_v19 = vpop.f32.mrf.mxu1 }
 0x10e   :  { %v93_v20 = vadd.f32 %v90_v19, %v39_v18 }
 0x110   :  { %143 = vtanh.f32 %v93_v20 }
 0x116   :  { %v144_v23 = vpop.eup %143 }
 0x117   :  { %v97_v25 = vmul.f32 %v144_v23, %v139_v22  ;;  %100 = vst.msk [vmem:[#allocation2] sm:$0x3] %vm99_vm1, %v144_v23 }
 0x118   :  { %121 = dma.vmem_to_hbm [thread:$0]  %s117_s30, 32, %s119_s7, [#allocation3]  }
 0x119   :  { %v98_v26 = vadd.f32 %v97_v25, %v68_v24 }
 0x11b   :  { %v102_v27 = vsel %vm99_vm1, %v98_v26, 0.0 }
 0x11c   :  { %103 = vadd.xlane.f32.xlu1 %v102_v27 }
 0x18f   :  { %v104_v29 = vpop.xlane.xlu1 %103 }
 0x190   :  { %v106_v30 = vadd.f32 %v140_v28, %v104_v29 }
 0x192   :  { %108 = vst.msk [vmem:[%s243_s3] sm:$0x3] %vm107_vm2, %v106_v30 }
 0x193   :  { %169 = dma.done.wait [#allocation3], 32  }
 0x194   :  { %170 = vsyncadd [#allocation3], 4294967264 }
 0x195   :  { %128 = vsyncpa [#allocation3], 1 }

</bundles_post_ra>
